<compile_context>
chip_gen: v7x
topology: tpu7x:2x2x1
jax: 0.10.0
libtpu: 0.0.40
codegen_flags: <defaults>
</compile_context>

<pallas_src>
import functools

import jax
import jax.numpy as jnp
from jax import lax
from jax.experimental import pallas as pl
from jax.experimental.pallas import tpu as pltpu

MAX_LANE_TILE = 1024  # node-tile width in lanes (multiple of 128 when tiling)
REF_PRECISION = lax.Precision.HIGHEST  # reference / host precompute only


def get_coefficient_preset(name, alpha=1, beta=1, gamma=1):
    if name == 'single':
        return [(alpha, beta, gamma)]
    elif name == 'independent-parts':
        return [(alpha, 0, 0), (0, beta, 0), (0, 0, gamma)]
    elif name == 'only-pseudoinverse':
        return [(0, beta, 0)]
    elif name == 'no-zero-impulse':
        return [(0, beta, 0), (0, 0, gamma)]
    elif name == 'no-high-pass':
        return [(alpha, 0, 0), (0, beta, 0)]
    elif name == 'independent-zero-impulse':
        return [(alpha, 0, 0), (0, beta, gamma)]
    elif name == 'independent-pseudoinverse':
        return [(alpha, 0, gamma), (0, beta, 0)]
    elif name == 'independent-high-pass':
        return [(alpha, beta, 0), (0, 0, gamma)]
    else:
        raise ValueError('Unknown coefficient preset: {}'.format(name))


def _round_up(x, m):
    return ((x + m - 1) // m) * m


# ---------------------------- in-kernel helpers -------------------------------------------

def _mm(a, b):
    # bf16 x bf16 -> f32 accumulation on the MXU (default precision).
    return jnp.dot(a, b, preferred_element_type=jnp.float32)


def _proj_dot(y_bf16, basis_t_bf16):
    # (rows, tn) . (ktot, tn)^T -> (rows, ktot): contract the lane/node axis of both
    # operands (A.B^T form) so the basis stream stays lane-dense in VMEM.
    return lax.dot_general(y_bf16, basis_t_bf16,
                           dimension_numbers=(((1,), (1,)), ((), ())),
                           preferred_element_type=jnp.float32)


def _gamma_mix(y_f32, gscales, cout):
    # sum_k eigengap*gamma_k * Y_k   (only nonzero coefficients; caller guarantees >=1)
    g = None
    for k, gs in enumerate(gscales):
        if gs != 0.0:
            term = gs * y_f32[k * cout:(k + 1) * cout, :]
            g = term if g is None else g + term
    return g


# ---------------------------- Stage 1: layer-0 linear fused with layer-1 projection --------

def _first_proj_kernel(pre_ref, w0_ref, b0_ref, wall_ref, bt_ref, proj_ref, *g_refs,
                       gscales, cout):
    # pre_ref : (K*cin, tn) bf16     w0_ref : (h0, K*cin) bf16   b0_ref : (h0, 1) f32
    # wall_ref: (K*cout, h0) bf16    bt_ref : (ktot, tn) bf16
    # proj_ref: (K*cout, ktot) f32 resident accumulator
    # g_refs  : optional ((cout, tn) bf16,) high-pass stream
    @pl.when(pl.program_id(0) == 0)
    def _():
        proj_ref[...] = jnp.zeros_like(proj_ref)

    # PreconvolvedLinear (K basis functions folded into the contraction) + ReLU.
    x = jnp.maximum(_mm(w0_ref[...], pre_ref[...]) + b0_ref[...], 0.0).astype(jnp.bfloat16)
    # First PinvConv: all K coefficient matmuls concatenated along the sublane axis.
    y = _mm(wall_ref[...], x)                                  # (K*cout, tn) f32
    proj_ref[...] += _proj_dot(y.astype(jnp.bfloat16), bt_ref[...])
    if g_refs:
        g_refs[0][...] = _gamma_mix(y, gscales, cout).astype(jnp.bfloat16)


def _first_proj_call(preconv_fm, w0_t, b0_col, w_all_t, basis_t, *,
                     gscales, cout, tile_n, has_gamma):
    kcin, n = preconv_fm.shape
    assert n % tile_n == 0, "node axis must be zero-padded to a multiple of tile_n"
    h0 = w0_t.shape[0]
    kcout = w_all_t.shape[0]
    ktot = basis_t.shape[0]
    grid = (n // tile_n,)
    in_specs = [
        pl.BlockSpec((kcin, tile_n), lambda i: (0, i)),
        pl.BlockSpec((h0, kcin), lambda i: (0, 0)),
        pl.BlockSpec((h0, 1), lambda i: (0, 0)),
        pl.BlockSpec((kcout, h0), lambda i: (0, 0)),
        pl.BlockSpec((ktot, tile_n), lambda i: (0, i)),
    ]
    proj_spec = pl.BlockSpec((kcout, ktot), lambda i: (0, 0))
    proj_shape = jax.ShapeDtypeStruct((kcout, ktot), jnp.float32)
    if has_gamma:
        out_specs = [proj_spec, pl.BlockSpec((cout, tile_n), lambda i: (0, i))]
        out_shape = [proj_shape, jax.ShapeDtypeStruct((cout, n), jnp.bfloat16)]
    else:
        out_specs, out_shape = proj_spec, proj_shape
    outs = pl.pallas_call(
        functools.partial(_first_proj_kernel, gscales=gscales, cout=cout),
        grid=grid, in_specs=in_specs, out_specs=out_specs, out_shape=out_shape,
        compiler_params=pltpu.CompilerParams(dimension_semantics=("arbitrary",)),
    )(preconv_fm, w0_t, b0_col, w_all_t, basis_t)
    if has_gamma:
        return outs[0], outs[1]
    return outs, None


# ---------------------------- Stage 2: fused back-projection (layer l) + projection (l+1) --

def _fused_bp_proj_kernel(mixed_ref, bprev_ref, wall_ref, bt_ref, *rest,
                          gscales, cout, has_gamma):
    # mixed_ref: (cprev, ktot) bf16   bprev_ref: (cprev, 1) f32
    # wall_ref : (K*cout, cprev) bf16 bt_ref   : (ktot, tn) bf16
    # rest: has_gamma -> (gprev (cprev,tn) bf16, proj (K*cout,ktot) f32, gout (cout,tn) bf16)
    #       else      -> (proj,)
    if has_gamma:
        gprev_ref, proj_ref, gout_ref = rest
    else:
        (proj_ref,) = rest
        gprev_ref = gout_ref = None

    @pl.when(pl.program_id(0) == 0)
    def _():
        proj_ref[...] = jnp.zeros_like(proj_ref)

    # Back-projection of layer l -> output of layer l, then ReLU.
    x = _mm(mixed_ref[...], bt_ref[...]) + bprev_ref[...]
    if has_gamma:
        x = x + gprev_ref[...].astype(jnp.float32)
    x = jnp.maximum(x, 0.0).astype(jnp.bfloat16)
    # Projection of layer l+1.
    y = _mm(wall_ref[...], x)                                   # (K*cout, tn) f32
    proj_ref[...] += _proj_dot(y.astype(jnp.bfloat16), bt_ref[...])
    if has_gamma:
        gout_ref[...] = _gamma_mix(y, gscales, cout).astype(jnp.bfloat16)


def _fused_bp_proj_call(mixed, b_prev_col, w_all_t, basis_t, g_prev, *,
                        gscales, cout, tile_n, has_gamma):
    cprev, ktot = mixed.shape
    kcout = w_all_t.shape[0]
    n = basis_t.shape[1]
    assert n % tile_n == 0, "node axis must be zero-padded to a multiple of tile_n"
    grid = (n // tile_n,)
    in_specs = [
        pl.BlockSpec((cprev, ktot), lambda i: (0, 0)),
        pl.BlockSpec((cprev, 1), lambda i: (0, 0)),
        pl.BlockSpec((kcout, cprev), lambda i: (0, 0)),
        pl.BlockSpec((ktot, tile_n), lambda i: (0, i)),
    ]
    args = [mixed, b_prev_col, w_all_t, basis_t]
    if has_gamma:
        in_specs.append(pl.BlockSpec((cprev, tile_n), lambda i: (0, i)))
        args.append(g_prev)
    proj_spec = pl.BlockSpec((kcout, ktot), lambda i: (0, 0))
    proj_shape = jax.ShapeDtypeStruct((kcout, ktot), jnp.float32)
    if has_gamma:
        out_specs = [proj_spec, pl.BlockSpec((cout, tile_n), lambda i: (0, i))]
        out_shape = [proj_shape, jax.ShapeDtypeStruct((cout, n), jnp.bfloat16)]
    else:
        out_specs, out_shape = proj_spec, proj_shape
    outs = pl.pallas_call(
        functools.partial(_fused_bp_proj_kernel, gscales=gscales, cout=cout,
                          has_gamma=has_gamma),
        grid=grid, in_specs=in_specs, out_specs=out_specs, out_shape=out_shape,
        compiler_params=pltpu.CompilerParams(dimension_semantics=("arbitrary",)),
    )(*args)
    if has_gamma:
        return outs[0], outs[1]
    return outs, None


# ---------------------------- Stage 3: final back-projection (no ReLU) ---------------------

def _final_back_kernel(mixed_ref, b_ref, bt_ref, *rest, has_gamma):
    if has_gamma:
        gprev_ref, out_ref = rest
    else:
        (out_ref,) = rest
        gprev_ref = None
    res = _mm(mixed_ref[...], bt_ref[...]) + b_ref[...]
    if has_gamma:
        res = res + gprev_ref[...].astype(jnp.float32)
    out_ref[...] = res


def _final_back_call(mixed, b_col, basis_t, g_prev, *, tile_n, has_gamma):
    cout, ktot = mixed.shape
    n = basis_t.shape[1]
    assert n % tile_n == 0, "node axis must be zero-padded to a multiple of tile_n"
    grid = (n // tile_n,)
    in_specs = [
        pl.BlockSpec((cout, ktot), lambda i: (0, 0)),
        pl.BlockSpec((cout, 1), lambda i: (0, 0)),
        pl.BlockSpec((ktot, tile_n), lambda i: (0, i)),
    ]
    args = [mixed, b_col, basis_t]
    if has_gamma:
        in_specs.append(pl.BlockSpec((cout, tile_n), lambda i: (0, i)))
        args.append(g_prev)
    return pl.pallas_call(
        functools.partial(_final_back_kernel, has_gamma=has_gamma),
        grid=grid, in_specs=in_specs,
        out_specs=pl.BlockSpec((cout, tile_n), lambda i: (0, i)),
        out_shape=jax.ShapeDtypeStruct((cout, n), jnp.float32),
        compiler_params=pltpu.CompilerParams(dimension_semantics=("parallel",)),
    )(*args)


# ---------------------------- glue: mixing, preconvolution, params, forward ----------------

def _mix_projection(proj, zvec, s_nz, cout, k0):
    """Tiny (K*cout, k0+k1) coefficient mixing between kernels (plain JAX)."""
    K = zvec.shape[0]
    p = proj.reshape(K, cout, -1)
    zero_cols = jnp.einsum('k,kcj->cj', zvec, p[:, :, :k0])
    nz_cols = jnp.einsum('kj,kcj->cj', s_nz, p[:, :, k0:])
    return jnp.concatenate([zero_cols, nz_cols], axis=1)


def preconvolve_input(coeffs, eigengap, zero_U, nonzero_U, nonzero_w, X):
    """Plain-JAX precompute (mirrors PinvGCN.preconvolve_input); node-major (K, N, cin)."""
    zero_U_X = jnp.dot(zero_U.T, X, precision=REF_PRECISION)
    nonzero_U_X = jnp.dot(nonzero_U.T, X, precision=REF_PRECISION)
    result = []
    for alpha, beta, gamma in coeffs:
        s = jnp.zeros_like(X)
        if alpha != 0 or gamma != 0:
            s = s + (alpha - gamma * eigengap) * jnp.dot(zero_U, zero_U_X,
                                                         precision=REF_PRECISION)
        if beta != 0 or gamma != 0:
            s = s + jnp.dot(nonzero_U,
                            eigengap * (beta / nonzero_w[:, None] - gamma) * nonzero_U_X,
                            precision=REF_PRECISION)
        if gamma != 0:
            s = s + eigengap * gamma * X
        result.append(s)
    return jnp.stack(result, axis=0)


def glorot(key, shape):
    fan_in, fan_out = shape[-2], shape[-1]
    limit = (6.0 / (fan_in + fan_out)) ** 0.5
    return jax.random.uniform(key, shape, jnp.float32, -limit, limit)


def init_params(key, coeffs, in_channels, hidden_channels, out_channels):
    K = len(coeffs)
    dims = [in_channels] + list(hidden_channels) + [out_channels]
    params = []
    for li in range(len(dims) - 1):
        key, kw, kb = jax.random.split(key, 3)
        W = glorot(kw, (K, dims[li], dims[li + 1]))
        b = 0.1 * jax.random.normal(kb, (dims[li + 1],), jnp.float32)
        params.append((W, b))
    return params


def _wall_t_bf16(W):
    K, cin, cout = W.shape
    return jnp.transpose(W, (0, 2, 1)).reshape(K * cout, cin).astype(jnp.bfloat16)


def pinvgcn_forward(params, preconv, zero_U, nonzero_U, nonzero_w, coeffs, eigengap):
    """Pallas forward (eval). preconv: (K, N, cin). Returns (N, out_channels) f32."""
    K, N, cin0 = preconv.shape
    depth = len(params)
    assert depth >= 2, "PinvGCN always has at least one hidden layer"
    k0 = zero_U.shape[1]
    k1 = nonzero_U.shape[1]
    ktot = k0 + k1

    # Node tile width: full array when small, else 1024 lanes (pad N with zero nodes).
    tn = N if N <= MAX_LANE_TILE else MAX_LANE_TILE
    n_pad = _round_up(N, tn)

    # Host-side layout plumbing: feature-major lane-dense bf16 streams,
    # one concatenated transposed basis (ktot, n_pad).
    preconv_fm = jnp.transpose(preconv, (0, 2, 1)).reshape(K * cin0, N)
    basis = jnp.concatenate([zero_U, nonzero_U], axis=1)            # (N, ktot)
    if n_pad != N:
        preconv_fm = jnp.zeros((K * cin0, n_pad), jnp.float32).at[:, :N].set(preconv_fm)
        basis = jnp.zeros((n_pad, ktot), jnp.float32).at[:N].set(basis)
    preconv_fm = preconv_fm.astype(jnp.bfloat16)
    basis_t = basis.T.astype(jnp.bfloat16)                          # (ktot, n_pad)

    # Compile-time per-coefficient scalars and the hoisted (K, k1) nonzero scale matrix.
    zscales = tuple(float(a) - eigengap * float(g) for a, b, g in coeffs)
    gscales = tuple(eigengap * float(g) for a, b, g in coeffs)
    has_gamma = any(gs != 0.0 for gs in gscales)
    zvec = jnp.asarray(zscales, jnp.float32)                         # (K,)
    s_nz = jnp.stack([eigengap * (float(b) / nonzero_w - float(g)) for a, b, g in coeffs],
                     axis=0).astype(jnp.float32)                     # (K, k1)

    # Stage 1: layer-0 PreconvolvedLinear (+ReLU) fused into layer-1 projection.
    W0, b0 = params[0]
    w0_t = W0.reshape(K * cin0, -1).T.astype(jnp.bfloat16)           # (h0, K*cin)
    b0_col = b0.reshape(-1, 1).astype(jnp.float32)
    W1, _ = params[1]
    cout1 = W1.shape[2]
    proj, g = _first_proj_call(preconv_fm, w0_t, b0_col, _wall_t_bf16(W1), basis_t,
                               gscales=gscales, cout=cout1, tile_n=tn, has_gamma=has_gamma)

    # Stage 2: for each middle layer l, fuse (back-project l + bias + ReLU) with
    # the projection of layer l+1.  Only tiny accumulators (+ optional gamma
    # stream) hit HBM between stages.
    for li in range(1, depth - 1):
        Wl, bl = params[li]
        cout_l = Wl.shape[2]
        Wn, _ = params[li + 1]
        cout_n = Wn.shape[2]
        mixed = _mix_projection(proj, zvec, s_nz, cout_l, k0).astype(jnp.bfloat16)
        proj, g = _fused_bp_proj_call(mixed, bl.reshape(-1, 1).astype(jnp.float32),
                                      _wall_t_bf16(Wn), basis_t, g,
                                      gscales=gscales, cout=cout_n, tile_n=tn,
                                      has_gamma=has_gamma)

    # Stage 3: final back-projection + bias (no ReLU on the last layer).
    W_last, b_last = params[-1]
    cout_last = W_last.shape[2]
    mixed = _mix_projection(proj, zvec, s_nz, cout_last, k0).astype(jnp.bfloat16)
    out_fm = _final_back_call(mixed, b_last.reshape(-1, 1).astype(jnp.float32), basis_t, g,
                              tile_n=tn, has_gamma=has_gamma)
    return out_fm.T[:N]                                              # node-major (N, cout)


def reference_forward(params, preconv, zero_U, nonzero_U, nonzero_w, coeffs, eigengap):
    """Pure-JAX f32 transliteration of the PyTorch forward (eval mode)."""
    W0, b0 = params[0]
    X = sum(jnp.dot(preconv[i], W0[i], precision=REF_PRECISION)
            for i in range(len(coeffs))) + b0
    for li in range(1, len(params)):
        X = jnp.maximum(X, 0.0)
        Wl, bl = params[li]
        zero_part = 0.0
        nonzero_part = 0.0
        result = 0.0
        for i, (alpha, beta, gamma) in enumerate(coeffs):
            Y = jnp.dot(X, Wl[i], precision=REF_PRECISION)
            if alpha != 0 or gamma != 0:
                zero_part = zero_part + (alpha - eigengap * gamma) * jnp.dot(
                    zero_U.T, Y, precision=REF_PRECISION)
            if beta != 0 or gamma != 0:
                nonzero_part = nonzero_part + (beta / nonzero_w[:, None] - gamma) * eigengap * jnp.dot(
                    nonzero_U.T, Y, precision=REF_PRECISION)
            if gamma != 0:
                result = result + eigengap * gamma * Y
        if not isinstance(zero_part, float):
            result = result + jnp.dot(zero_U, zero_part, precision=REF_PRECISION)
        if not isinstance(nonzero_part, float):
            result = result + jnp.dot(nonzero_U, nonzero_part, precision=REF_PRECISION)
        X = result + bl
    return X


if __name__ == "__main__":
    key = jax.random.PRNGKey(0)

    # Small synthetic "spectral data" and input.
    N, in_channels, out_channels = 64, 16, 8
    hidden_channels = [32, 32]
    k0, k1 = 8, 24
    eigengap = 0.37

    key, kz, kn, kw, kx = jax.random.split(key, 5)
    zero_U = jax.random.normal(kz, (N, k0), jnp.float32) / jnp.sqrt(N)
    nonzero_U = jax.random.normal(kn, (N, k1), jnp.float32) / jnp.sqrt(N)
    nonzero_w = jax.random.uniform(kw, (k1,), jnp.float32, 0.5, 2.0)
    X_in = jax.random.normal(kx, (N, in_channels), jnp.float32)

    # Exercise both code paths: with high-pass (gamma stream) and without it.
    for preset in ('independent-parts', 'no-high-pass'):
        coeffs = get_coefficient_preset(preset)
        key, kp = jax.random.split(key)
        params = init_params(kp, coeffs, in_channels, hidden_channels, out_channels)

        preconv = preconvolve_input(coeffs, eigengap, zero_U, nonzero_U, nonzero_w, X_in)

        out = pinvgcn_forward(params, preconv, zero_U, nonzero_U, nonzero_w, coeffs, eigengap)
        out = jax.block_until_ready(out)

        ref = reference_forward(params, preconv, zero_U, nonzero_U, nonzero_w, coeffs, eigengap)

        assert out.shape == (N, out_channels), (preset, out.shape)
        assert bool(jnp.all(jnp.isfinite(out))), preset
        # bf16 streams with f32 accumulation vs f32 HIGHEST reference: loose tolerance.
        assert bool(jnp.allclose(out, ref, rtol=1e-1, atol=1e-1)), preset
        rel = float(jnp.linalg.norm(out - ref) / jnp.linalg.norm(ref))
        assert rel < 3e-2, (preset, rel)

    print("KERNEL_OK")
</pallas_src>

<mosaic_0001>
module attributes {stable_mosaic.version = 11 : i64} {
  func.func @_first_proj_kernel(%arg0: i32, %arg1: memref<48x64xbf16, #tpu.memory_space<vmem>>, %arg2: memref<32x48xbf16, #tpu.memory_space<vmem>>, %arg3: memref<32x1xf32, #tpu.memory_space<vmem>>, %arg4: memref<96x32xbf16, #tpu.memory_space<vmem>>, %arg5: memref<32x64xbf16, #tpu.memory_space<vmem>>, %arg6: memref<96x32xf32, #tpu.memory_space<vmem>>, %arg7: memref<32x64xbf16, #tpu.memory_space<vmem>>) attributes {dimension_semantics = [#tpu.dimension_semantics<arbitrary>], iteration_bounds = array<i64: 1>, scalar_prefetch = 0 : i64, scratch_operands = 0 : i64, tpu.core_type = #tpu.core_type<tc>, window_params = [{transform_indices = @transform_0, window_bounds = array<i64: 48, 64>}, {pipeline_mode = #tpu.pipeline_mode<synchronous>, transform_indices = @transform_1, window_bounds = array<i64: 32, 48>}, {pipeline_mode = #tpu.pipeline_mode<synchronous>, transform_indices = @transform_2, window_bounds = array<i64: 32, 1>}, {pipeline_mode = #tpu.pipeline_mode<synchronous>, transform_indices = @transform_3, window_bounds = array<i64: 96, 32>}, {transform_indices = @transform_4, window_bounds = array<i64: 32, 64>}, {pipeline_mode = #tpu.pipeline_mode<synchronous>, transform_indices = @transform_5, window_bounds = array<i64: 96, 32>}, {transform_indices = @transform_6, window_bounds = array<i64: 32, 64>}]} {
    %c0_i32 = arith.constant 0 : i32
    %0 = arith.cmpi eq, %arg0, %c0_i32 : i32
    %1 = arith.extui %0 : i1 to i32
    %c0_i32_0 = arith.constant 0 : i32
    %2 = arith.cmpi ne, %1, %c0_i32_0 : i32
    scf.if %2 {
      %cst_20 = arith.constant 0.000000e+00 : f32
      %25 = vector.broadcast %cst_20 : f32 to vector<96x32xf32>
      %c0_21 = arith.constant 0 : index
      %c0_22 = arith.constant 0 : index
      %26 = vector.load %arg6[%c0_21, %c0_22] : memref<96x32xf32, #tpu.memory_space<vmem>>, vector<96x32xf32>
      tpu.vector_store %arg6[%c0_21, %c0_22], %25 {strides = array<i32>} : memref<96x32xf32, #tpu.memory_space<vmem>>, vector<96x32xf32>,
    } else {
    }
    %c0 = arith.constant 0 : index
    %c0_1 = arith.constant 0 : index
    %3 = vector.load %arg2[%c0, %c0_1] : memref<32x48xbf16, #tpu.memory_space<vmem>>, vector<32x48xbf16>
    %c0_2 = arith.constant 0 : index
    %c0_3 = arith.constant 0 : index
    %4 = vector.load %arg1[%c0_2, %c0_3] : memref<48x64xbf16, #tpu.memory_space<vmem>>, vector<48x64xbf16>
    %cst = arith.constant dense<0.000000e+00> : vector<32x64xf32>
    %5 = tpu.matmul %3, %4, %cst {dimension_numbers = #tpu.dot_dimension_numbers<[1], [0], [0], [1], [0, 0, 1, 1], [], []>} : vector<32x48xbf16>, vector<48x64xbf16>, vector<32x64xf32> -> vector<32x64xf32>
    %c0_4 = arith.constant 0 : index
    %c0_5 = arith.constant 0 : index
    %6 = vector.load %arg3[%c0_4, %c0_5] : memref<32x1xf32, #tpu.memory_space<vmem>>, vector<32x1xf32>
    %7 = vector.broadcast %6 : vector<32x1xf32> to vector<32x64xf32>
    %8 = arith.addf %5, %7 : vector<32x64xf32>
    %cst_6 = arith.constant 0.000000e+00 : f32
    %9 = vector.broadcast %cst_6 : f32 to vector<32x64xf32>
    %10 = arith.maximumf %8, %9 : vector<32x64xf32>
    %11 = arith.truncf %10 : vector<32x64xf32> to vector<32x64xbf16>
    %c0_7 = arith.constant 0 : index
    %c0_8 = arith.constant 0 : index
    %12 = vector.load %arg4[%c0_7, %c0_8] : memref<96x32xbf16, #tpu.memory_space<vmem>>, vector<96x32xbf16>
    %cst_9 = arith.constant dense<0.000000e+00> : vector<96x64xf32>
    %13 = tpu.matmul %12, %11, %cst_9 {dimension_numbers = #tpu.dot_dimension_numbers<[1], [0], [0], [1], [0, 0, 1, 1], [], []>} : vector<96x32xbf16>, vector<32x64xbf16>, vector<96x64xf32> -> vector<96x64xf32>
    %c0_10 = arith.constant 0 : index
    %c0_11 = arith.constant 0 : index
    %14 = vector.load %arg6[%c0_10, %c0_11] : memref<96x32xf32, #tpu.memory_space<vmem>>, vector<96x32xf32>
    %15 = arith.truncf %13 : vector<96x64xf32> to vector<96x64xbf16>
    %c0_12 = arith.constant 0 : index
    %c0_13 = arith.constant 0 : index
    %16 = vector.load %arg5[%c0_12, %c0_13] : memref<32x64xbf16, #tpu.memory_space<vmem>>, vector<32x64xbf16>
    %cst_14 = arith.constant dense<0.000000e+00> : vector<96x32xf32>
    %17 = tpu.matmul %15, %16, %cst_14 {dimension_numbers = #tpu.dot_dimension_numbers<[1], [1], [0], [0], [0, 0, 1, 0], [], []>} : vector<96x64xbf16>, vector<32x64xbf16>, vector<96x32xf32> -> vector<96x32xf32>
    %18 = arith.addf %14, %17 : vector<96x32xf32>
    %c0_15 = arith.constant 0 : index
    %c0_16 = arith.constant 0 : index
    %19 = vector.load %arg6[%c0_15, %c0_16] : memref<96x32xf32, #tpu.memory_space<vmem>>, vector<96x32xf32>
    tpu.vector_store %arg6[%c0_15, %c0_16], %18 {strides = array<i32>} : memref<96x32xf32, #tpu.memory_space<vmem>>, vector<96x32xf32>,
    %20 = vector.extract_strided_slice %13 {offsets = [64, 0], sizes = [32, 64], strides = [1, 1]} : vector<96x64xf32> to vector<32x64xf32>
    %cst_17 = arith.constant 3.700000e-01 : f32
    %21 = vector.broadcast %cst_17 : f32 to vector<32x64xf32>
    %22 = arith.mulf %21, %20 : vector<32x64xf32>
    %23 = arith.truncf %22 : vector<32x64xf32> to vector<32x64xbf16>
    %c0_18 = arith.constant 0 : index
    %c0_19 = arith.constant 0 : index
    %24 = vector.load %arg7[%c0_18, %c0_19] : memref<32x64xbf16, #tpu.memory_space<vmem>>, vector<32x64xbf16>
    tpu.vector_store %arg7[%c0_18, %c0_19], %23 {strides = array<i32>} : memref<32x64xbf16, #tpu.memory_space<vmem>>, vector<32x64xbf16>,
    return
  }
  func.func @transform_0(%arg0: i32) -> (i32, i32) {
    %c0_i32 = arith.constant 0 : i32
    %c0_i32_0 = arith.constant 0 : i32
    return %c0_i32, %arg0 : i32, i32
  }
  func.func @transform_1(%arg0: i32) -> (i32, i32) {
    %c0_i32 = arith.constant 0 : i32
    %c0_i32_0 = arith.constant 0 : i32
    %c0_i32_1 = arith.constant 0 : i32
    return %c0_i32, %c0_i32_0 : i32, i32
  }
  func.func @transform_2(%arg0: i32) -> (i32, i32) {
    %c0_i32 = arith.constant 0 : i32
    %c0_i32_0 = arith.constant 0 : i32
    %c0_i32_1 = arith.constant 0 : i32
    return %c0_i32, %c0_i32_0 : i32, i32
  }
  func.func @transform_3(%arg0: i32) -> (i32, i32) {
    %c0_i32 = arith.constant 0 : i32
    %c0_i32_0 = arith.constant 0 : i32
    %c0_i32_1 = arith.constant 0 : i32
    return %c0_i32, %c0_i32_0 : i32, i32
  }
  func.func @transform_4(%arg0: i32) -> (i32, i32) {
    %c0_i32 = arith.constant 0 : i32
    %c0_i32_0 = arith.constant 0 : i32
    return %c0_i32, %arg0 : i32, i32
  }
  func.func @transform_5(%arg0: i32) -> (i32, i32) {
    %c0_i32 = arith.constant 0 : i32
    %c0_i32_0 = arith.constant 0 : i32
    %c0_i32_1 = arith.constant 0 : i32
    return %c0_i32, %c0_i32_0 : i32, i32
  }
  func.func @transform_6(%arg0: i32) -> (i32, i32) {
    %c0_i32 = arith.constant 0 : i32
    %c0_i32_0 = arith.constant 0 : i32
    return %c0_i32, %arg0 : i32, i32
  }
}

</mosaic_0001>

<bundles_post_ra>
// kernel: tpu_custom_call.1
= control target key start
LH: loop header
LB: loop body
LE: loop exit
PB: predicated region body
PF: predicated region fallthrough
CT: control target
= control target key end

     0   :  { %vm103_vm0 = vcmask 392192   ;;  %v658_v2 = vmov 0   ;;  %s915_s0 = inlined_call_operand.vmem [shape: bf16[48,64], index: 0, kind: input, shape index: {}]   ;;  %s916_s1 = inlined_call_operand.vmem [shape: bf16[32,48], index: 1, kind: input, shape index: {}]   ;;  %s917_s2 = inlined_call_operand.vmem [shape: f32[32,1], index: 2, kind: input, shape index: {}]   ;;  %s918_s3 = inlined_call_operand.vmem [shape: bf16[96,32], index: 3, kind: input, shape index: {}]   ;;  %s919_s4 = inlined_call_operand.vmem [shape: bf16[32,64], index: 4, kind: input, shape index: {}]   ;;  %s920_s5 = inlined_call_operand.vmem [shape: f32[96,32], index: 5, kind: output, shape index: {0}]   ;;  %s921_s6 = inlined_call_operand.hbm [shape: bf16[32,64], index: 6, kind: output, shape index: {1}]  }
   0x1   :  { %v621_v0 = vld [vmem:[%s915_s0] sm:$0xff]   ;;  %v622_v1 = vld [vmem:[%s915_s0 + $0x8] sm:$0xff]   ;;  %619 = vset.pattern.permute.xlu0 %v658_v2  ;;  %620 = vset.pattern.permute.xlu1 %v658_v2  ;;  %v623_v4 = vld [vmem:[%s915_s0 + $0x10] sm:$0xff]  }
   0x2   :  { %570 = vmatprep.subr.bf16.mxu1 %v621_v0  ;;  %v624_v3 = vld [vmem:[%s916_s1] sm:$0xff]   ;;  %v53_v6 = vld [vmem:[%s917_s2 + $0x10] sm:$0xff]  ;;  %v52_v7 = vld [vmem:[%s917_s2 + $0x8] sm:$0xff] }
   0x3   :  { %571 = vmatpush3.bf16.msra.mxu1 %v621_v0  ;;  %576 = vmatprep.mubr.msk.bf16.mxu1 %vm103_vm0, %v624_v3  ;;  %v51_v5 = vld [vmem:[%s917_s2] sm:$0xff]  ;;  %v54_v8 = vld [vmem:[%s917_s2 + $0x18] sm:$0xff]  ;;  %v625_v9 = vld [vmem:[%s916_s1 + $0x8] sm:$0xff]  }
   0x4   :  { %572 = vmatprep.subr.bf16.mxu1 %v622_v1  ;;  %57 = vperm.xlu0 %619, %v51_v5  }
   0x5   :  { %67 = vperm.xlu1 %620, %v53_v6  }
   0x7   :  { %573 = vmatpush3.bf16.msra.mxu1 %v622_v1 }
   0x8   :  { %574 = vmatprep.subr.bf16.mxu1 %v623_v4  ;;  %62 = vperm.xlu0 %619, %v52_v7  }
   0x9   :  { %72 = vperm.xlu1 %620, %v54_v8  }
   0xb   :  { %575 = vmatpush3.bf16.msra.mxu1 %v623_v4 }
   0xc   :  { %12 = vsyncpa [#allocation3], 0  ;;  %vm28_vm1 = vcmask 261120   ;;  %v626_v10 = vld [vmem:[%s918_s3] sm:$0xff]   ;;  %vm339_vm2 = vcmask 523264   ;;  %v633_v12 = vld [vmem:[%s919_s4 + $0x8] sm:$0xff]  }
   0xd   :  { %v632_v11 = vld [vmem:[%s919_s4] sm:$0xff]   ;;  %v627_v32 = vld [vmem:[%s918_s3 + $0x8] sm:$0xff]   ;;  %v628_v33 = vld [vmem:[%s918_s3 + $0x10] sm:$0xff]   ;;  %v362_v37 = vsel %vm339_vm2, %v633_v12, 0  ;;  %v659_v38 = vmov 0.0   ;;  %vm489_vm3 = vcmask 519168  }
   0xe   :  { %577 = vmatmul.mubr.msk.bf16.vlgmr.msra.gmra.mrb[0].mxu1 %vm103_vm0, %v625_v9  ;;  %612 = vmatprep.subr.msk.bf16.mxu0 %vm339_vm2, %v632_v11  ;;  %v359_v13 = vsel %vm339_vm2, %v632_v11, 0  ;;  %v629_v34 = vld [vmem:[%s918_s3 + $0x18] sm:$0xff]   ;;  %v630_v35 = vld [vmem:[%s918_s3 + $0x20] sm:$0xff]   ;;  %v631_v36 = vld [vmem:[%s918_s3 + $0x28] sm:$0xff]   ;;  %31 = vst.msk [vmem:[%s920_s5 + $0x10] sm:$0xff] %vm28_vm1, %v659_v38  ;;  %s660_s22 = smov [#allocation2]  }
   0xf   :  { %584 = vmatprep.mubr.msk.bf16.mxu1 %vm28_vm1, %v626_v10  ;;  %597 = vmatpush3.bf16.xpose.msra.mxu0 %v359_v13  ;;  %29 = vst.msk [vmem:[%s920_s5] sm:$0xff] %vm28_vm1, %v659_v38  ;;  %30 = vst.msk [vmem:[%s920_s5 + $0x8] sm:$0xff] %vm28_vm1, %v659_v38  ;;  %s501_s23 = sshll.u32 %s660_s22, 4  ;;  %s502_s23 = int_to_ptr.vmem [resolvable:$true] %s501_s23 }
  0x10   :  { %613 = vmatprep.subr.msk.bf16.mxu0 %vm339_vm2, %v633_v12  ;;  %32 = vst.msk [vmem:[%s920_s5 + $0x18] sm:$0xff] %vm28_vm1, %v659_v38  ;;  %33 = vst.msk [vmem:[%s920_s5 + $0x20] sm:$0xff] %vm28_vm1, %v659_v38  ;;  %s634_s24 = scalar_lea.vmem %s502_s23, 256  ;;  %p639_p1 = scmp.lt.s32.totalorder %s502_s23, %s502_s23 }
  0x11   :  { %34 = vst.msk [vmem:[%s920_s5 + $0x28] sm:$0xff] %vm28_vm1, %v659_v38  ;;  %35 = vst.msk [vmem:[%s920_s5 + $0x30] sm:$0xff] %vm28_vm1, %v659_v38  ;;  %p635_p0 = scmp.ne.s32.totalorder %s502_s23, %s634_s24  ;;  %p640_p2 = scmp.lt.s32.totalorder %s634_s24, %s634_s24 }
  0x12   :  { %36 = vst.msk [vmem:[%s920_s5 + $0x38] sm:$0xff] %vm28_vm1, %v659_v38  ;;  %37 = vst.msk [vmem:[%s920_s5 + $0x40] sm:$0xff] %vm28_vm1, %v659_v38 }
  0x13   :  { %38 = vst.msk [vmem:[%s920_s5 + $0x48] sm:$0xff] %vm28_vm1, %v659_v38  ;;  %39 = vst.msk [vmem:[%s920_s5 + $0x50] sm:$0xff] %vm28_vm1, %v659_v38  ;;  %p641_p3 = por %p640_p2, %p639_p1 }
  0x14   :  { %40 = vst.msk [vmem:[%s920_s5 + $0x58] sm:$0xff] %vm28_vm1, %v659_v38 }
  0x15   :  { %p642_p4 = pnand %p641_p3, %p635_p0 }
  0x17   :  { %599 = vmatpush3.bf16.xpose.msra.mxu0 %v362_v37 }
  0x83   :  { %v58_v15 = vpop.permute.xlu0 %57 }
  0x84   :  { %v68_v14 = vpop.permute.xlu1 %67 }
  0x87   :  { %v63_v22 = vpop.permute.xlu0 %62 }
  0x88   :  { %v73_v17 = vpop.permute.xlu1 %72 }
  0xe1   :  { %v578_v16 = vpop.f32.mrb[0].mxu1 }
  0xe2   :  { %v153_v18 = vadd.f32 %v578_v16, %v68_v14  ;;  %v144_v19 = vpop.f32.mrb[1].mxu1 }
  0xe3   :  { %v145_v20 = vadd.f32 %v144_v19, %v58_v15  ;;  %v579_v21 = vpop.f32.mrb[2].mxu1 }
  0xe4   :  { %v156_v23 = vadd.f32 %v579_v21, %v73_v17  ;;  %v147_v24 = vpop.f32.mrb[3].mxu1  ;;  %v161_v26 = vmax.f32 %v153_v18, 0.0 }
  0xe5   :  { %v148_v25 = vadd.f32 %v147_v24, %v63_v22  ;;  %v159_v28 = vmax.f32 %v145_v20, 0.0 }
  0xe6   :  { %v162_v27 = vmax.f32 %v156_v23, 0.0 }
  0xe7   :  { %v160_v29 = vmax.f32 %v148_v25, 0.0 }
  0xe8   :  { %v164_v30 = vpack.c.bf16 %v162_v27, %v161_v26 }
  0xe9   :  { %v163_v31 = vpack.c.bf16 %v160_v29, %v159_v28 }
  0xeb   :  { %580 = vmatprep.subr.bf16.mxu1 %v163_v31 }
  0xec   :  { %581 = vmatpush3.bf16.msra.mxu1 %v163_v31 }
  0xed   :  { %582 = vmatprep.subr.bf16.mxu1 %v164_v30 }
  0xf0   :  { %583 = vmatpush3.bf16.msra.mxu1 %v164_v30 }
  0xf3   :  { %585 = vmatmul.mubr.msk.bf16.vlgmr.msra.gmra.mrb[4].mxu1 %vm28_vm1, %v627_v32 }
  0xf4   :  { %588 = vmatprep.mubr.msk.bf16.mxu1 %vm28_vm1, %v628_v33 }
  0xfb   :  { %589 = vmatmul.mubr.msk.bf16.gmra.mrb[8].mxu1 %vm28_vm1, %v629_v34 }
  0xfc   :  { %592 = vmatprep.mubr.msk.bf16.mxu1 %vm28_vm1, %v630_v35 }
 0x103   :  { %593 = vmatmul.mubr.msk.bf16.gmra.mrb[12].mxu1 %vm28_vm1, %v631_v36 }
 0x1c6   :  { %v586_v39 = vpop.f32.mrb[4].mxu1 }
 0x1c7   :  { %v260_v40 = vpop.f32.mrb[5].mxu1 }
 0x1c8   :  { %v587_v41 = vpop.f32.mrb[6].mxu1 }
 0x1c9   :  { %v320_v42 = vpack.c.bf16 %v587_v41, %v586_v39  ;;  %v263_v43 = vpop.f32.mrb[7].mxu1 }
 0x1ca   :  { %v319_v44 = vpack.c.bf16 %v263_v43, %v260_v40 }
 0x1cc   :  { %600 = vmatprep.mubr.msk.bf16.mxu0 %vm339_vm2, %v319_v44 }
 0x1cd   :  { %601 = vmatmul.mubr.msk.bf16.vlgmr.msra.gmra.mrb[0].mxu0 %vm339_vm2, %v320_v42 }
 0x1ce   :  { %v590_v45 = vpop.f32.mrb[8].mxu1 }
 0x1cf   :  { %v276_v46 = vpop.f32.mrb[9].mxu1 }
 0x1d0   :  { %v591_v47 = vpop.f32.mrb[10].mxu1 }
 0x1d1   :  { %v322_v48 = vpack.c.bf16 %v591_v47, %v590_v45  ;;  %v279_v49 = vpop.f32.mrb[11].mxu1 }
 0x1d2   :  { %v321_v50 = vpack.c.bf16 %v279_v49, %v276_v46 }
 0x1d4   :  { %604 = vmatprep.mubr.msk.bf16.mxu0 %vm339_vm2, %v321_v50 }
 0x1d5   :  { %605 = vmatmul.mubr.msk.bf16.gmra.mrb[4].mxu0 %vm339_vm2, %v322_v48 }
 0x1d6   :  { %v594_v51 = vpop.f32.mrb[12].mxu1 }
 0x1d7   :  { %v471_v52 = vmul.f32 0.37, %v594_v51  ;;  %v292_v53 = vpop.f32.mrb[13].mxu1 }
 0x1d8   :  { %v469_v54 = vmul.f32 0.37, %v292_v53  ;;  %v595_v55 = vpop.f32.mrb[14].mxu1 }
 0x1d9   :  { %v547_v56 = vpack.c.bf16 %v471_v52, %v471_v52  ;;  %v324_v57 = vpack.c.bf16 %v595_v55, %v594_v51  ;;  %v472_v58 = vmul.f32 0.37, %v595_v55  ;;  %v295_v59 = vpop.f32.mrb[15].mxu1 }
 0x1da   :  { %v545_v60 = vpack.c.bf16 %v469_v54, %v469_v54  ;;  %v323_v61 = vpack.c.bf16 %v295_v59, %v292_v53  ;;  %v470_v62 = vmul.f32 0.37, %v295_v59 }
 0x1db   :  { %492 = vst.msk [vmem:[#allocation2 + $0x8] sm:$0xf] %vm489_vm3, %v547_v56  ;;  %v548_v63 = vpack.c.bf16 %v472_v58, %v472_v58 }
 0x1dc   :  { %490 = vst.msk [vmem:[#allocation2] sm:$0xf] %vm489_vm3, %v545_v60  ;;  %v546_v0 = vpack.c.bf16 %v470_v62, %v470_v62  ;;  %608 = vmatprep.mubr.msk.bf16.mxu0 %vm339_vm2, %v323_v61 }
 0x1dd   :  { %493 = vst.msk [vmem:[#allocation2 + $0xc] sm:$0xf] %vm489_vm3, %v548_v63  ;;  %609 = vmatmul.mubr.msk.bf16.gmra.mrb[8].mxu0 %vm339_vm2, %v324_v57 }
 0x1de   :  { %491 = vst.msk [vmem:[#allocation2 + $0x4] sm:$0xf] %vm489_vm3, %v546_v0 }
 0x1df   :  { %645 = shalt.err (!%p642_p4)
}
 0x1e0   :  { %s646_s27 = scalar_lea.hbm %s921_s6, 256 }
 0x1e1   :  { %p647_p5 = scmp.ne.s32.totalorder %s921_s6, %s646_s27  ;;  %p650_p6 = scmp.lt.u32.totalorder %s646_s27, %s921_s6 }
 0x1e3   :  { %p652_p7 = pnand %p650_p6, %p647_p5 }
 0x1e5   :  { %655 = shalt.err (!%p652_p7)
}
 0x1e6   :  { %s661_s8 = smov 64   ;;  %s662_s3 = smov 4   ;;  %v309_v1 = vld [vmem:[%s920_s5 + $0x10] sm:$0xff]  ;;  %v307_v2 = vld [vmem:[%s920_s5] sm:$0xff]  ;;  %v310_v4 = vld [vmem:[%s920_s5 + $0x18] sm:$0xff] }
 0x1e7   :  { %507 = dma.vmem_to_hbm [thread:$0]  %s502_s23, 256, %s921_s6, [#allocation3], %s661_s8, %s661_s8, %s662_s3  }
 0x1e8   :  { %v308_v7 = vld [vmem:[%s920_s5 + $0x8] sm:$0xff]  ;;  %v313_v13 = vld [vmem:[%s920_s5 + $0x30] sm:$0xff]  ;;  %v311_v14 = vld [vmem:[%s920_s5 + $0x20] sm:$0xff] }
 0x1e9   :  { %v314_v16 = vld [vmem:[%s920_s5 + $0x38] sm:$0xff]  ;;  %v312_v19 = vld [vmem:[%s920_s5 + $0x28] sm:$0xff]  ;;  %v317_v25 = vld [vmem:[%s920_s5 + $0x50] sm:$0xff] }
 0x1ea   :  { %v315_v26 = vld [vmem:[%s920_s5 + $0x40] sm:$0xff]  ;;  %v318_v28 = vld [vmem:[%s920_s5 + $0x58] sm:$0xff]  ;;  %v316_v31 = vld [vmem:[%s920_s5 + $0x48] sm:$0xff] }
 0x2a0   :  { %v602_v3 = vpop.f32.mrb[0].mxu0 }
 0x2a1   :  { %v447_v5 = vadd.f32 %v602_v3, %v309_v1  ;;  %v398_v6 = vpop.f32.mrb[1].mxu0 }
 0x2a2   :  { %v445_v8 = vadd.f32 %v398_v6, %v307_v2  ;;  %v603_v9 = vpop.f32.mrb[2].mxu0 }
 0x2a3   :  { %459 = vst.msk [vmem:[%s920_s5 + $0x10] sm:$0xff] %vm28_vm1, %v447_v5  ;;  %v448_v10 = vadd.f32 %v603_v9, %v310_v4  ;;  %v401_v11 = vpop.f32.mrb[3].mxu0 }
 0x2a4   :  { %457 = vst.msk [vmem:[%s920_s5] sm:$0xff] %vm28_vm1, %v445_v8  ;;  %v446_v12 = vadd.f32 %v401_v11, %v308_v7 }
 0x2a5   :  { %460 = vst.msk [vmem:[%s920_s5 + $0x18] sm:$0xff] %vm28_vm1, %v448_v10 }
 0x2a6   :  { %458 = vst.msk [vmem:[%s920_s5 + $0x8] sm:$0xff] %vm28_vm1, %v446_v12 }
 0x2a8   :  { %v606_v15 = vpop.f32.mrb[4].mxu0 }
 0x2a9   :  { %v451_v17 = vadd.f32 %v606_v15, %v313_v13  ;;  %v414_v18 = vpop.f32.mrb[5].mxu0 }
 0x2aa   :  { %v449_v20 = vadd.f32 %v414_v18, %v311_v14  ;;  %v607_v21 = vpop.f32.mrb[6].mxu0 }
 0x2ab   :  { %463 = vst.msk [vmem:[%s920_s5 + $0x30] sm:$0xff] %vm28_vm1, %v451_v17  ;;  %v452_v22 = vadd.f32 %v607_v21, %v314_v16  ;;  %v417_v23 = vpop.f32.mrb[7].mxu0 }
 0x2ac   :  { %461 = vst.msk [vmem:[%s920_s5 + $0x20] sm:$0xff] %vm28_vm1, %v449_v20  ;;  %v450_v24 = vadd.f32 %v417_v23, %v312_v19 }
 0x2ad   :  { %464 = vst.msk [vmem:[%s920_s5 + $0x38] sm:$0xff] %vm28_vm1, %v452_v22 }
 0x2ae   :  { %462 = vst.msk [vmem:[%s920_s5 + $0x28] sm:$0xff] %vm28_vm1, %v450_v24 }
 0x2b0   :  { %v610_v27 = vpop.f32.mrb[8].mxu0 }
 0x2b1   :  { %v455_v29 = vadd.f32 %v610_v27, %v317_v25  ;;  %v430_v30 = vpop.f32.mrb[9].mxu0 }
 0x2b2   :  { %v453_v32 = vadd.f32 %v430_v30, %v315_v26  ;;  %v611_v33 = vpop.f32.mrb[10].mxu0 }
 0x2b3   :  { %467 = vst.msk [vmem:[%s920_s5 + $0x50] sm:$0xff] %vm28_vm1, %v455_v29  ;;  %v456_v34 = vadd.f32 %v611_v33, %v318_v28  ;;  %v433_v35 = vpop.f32.mrb[11].mxu0 }
 0x2b4   :  { %465 = vst.msk [vmem:[%s920_s5 + $0x40] sm:$0xff] %vm28_vm1, %v453_v32  ;;  %v454_v36 = vadd.f32 %v433_v35, %v316_v31 }
 0x2b5   :  { %468 = vst.msk [vmem:[%s920_s5 + $0x58] sm:$0xff] %vm28_vm1, %v456_v34 }
 0x2b6   :  { %466 = vst.msk [vmem:[%s920_s5 + $0x48] sm:$0xff] %vm28_vm1, %v454_v36 }
 0x2b7   :  { %656 = dma.done.wait [#allocation3], 256  }
 0x2b8   :  { %657 = vsyncadd [#allocation3], 4294967040 }
 0x2b9   :  { %513 = vsyncpa [#allocation3], 1 }

</bundles_post_ra>
